<compile_context>
chip_gen: v7x
topology: tpu7x:2x2x1
jax: 0.10.0
libtpu: 0.0.40
codegen_flags: <defaults>
</compile_context>

<pallas_src>
from functools import partial

import jax
import jax.numpy as jnp
from jax.experimental import pallas as pl
from jax.experimental.pallas import tpu as pltpu

_H1 = 256          # hidden 1
_H2 = 128          # hidden 2
_LANE = 128        # TPU lane width
_SUBLANE = 8       # f32 sublane tile
_MAX_BATCH_TILE = 1024   # single-TC chips prefer one big tile


def _round_up(x, m):
    return ((x + m - 1) // m) * m


def _cdiv(a, b):
    return -(-a // b)


def _num_tensorcores():
    """Best-effort detection of TensorCores per chip (v7x has 2)."""
    try:
        kind = jax.devices()[0].device_kind.lower()
        if "v7" in kind or "7x" in kind:
            return 2
    except Exception:
        pass
    return 1


_NUM_TC = _num_tensorcores()


def _batch_tiling(B):
    """Balanced batch tiles: one big tile on single-TC chips, >=2 on v7x."""
    n_tiles = max(1, _cdiv(B, _MAX_BATCH_TILE))
    if _NUM_TC >= 2 and B >= 2 * _SUBLANE:
        n_tiles = max(n_tiles, _NUM_TC)
    tb = _round_up(_cdiv(B, n_tiles), _SUBLANE)
    grid = _cdiv(B, tb)
    return tb, grid


def _mlp_head_kernel(x_ref, w1_ref, b1_ref, w2_ref, b2_ref, wh_ref, bh_ref, out_ref):
    """Fused 2-layer ReLU MLP + linear head for one batch tile, all in VMEM."""
    x = x_ref[...]
    h1 = jnp.dot(x, w1_ref[...], preferred_element_type=jnp.float32) + b1_ref[...]
    h1 = jnp.maximum(h1, 0.0)
    h2 = jnp.dot(h1, w2_ref[...], preferred_element_type=jnp.float32) + b2_ref[...]
    h2 = jnp.maximum(h2, 0.0)
    logits = jnp.dot(h2, wh_ref[...], preferred_element_type=jnp.float32) + bh_ref[...]
    out_ref[...] = logits.astype(out_ref.dtype)


def _run_mlp(state, w1, b1, w2, b2, wh, bh):
    """One pallas_call over balanced batch tiles; output is lane-dense [B, n_pad]."""
    B, D = state.shape
    n_pad = wh.shape[1]
    tb, grid = _batch_tiling(B)
    return pl.pallas_call(
        _mlp_head_kernel,
        out_shape=jax.ShapeDtypeStruct((B, n_pad), jnp.float32),
        grid=(grid,),
        in_specs=[
            pl.BlockSpec((tb, D), lambda i: (i, 0)),        # state tile (edge masked)
            pl.BlockSpec((D, _H1), lambda i: (0, 0)),       # w1 (resident)
            pl.BlockSpec((1, _H1), lambda i: (0, 0)),       # b1
            pl.BlockSpec((_H1, _H2), lambda i: (0, 0)),     # w2
            pl.BlockSpec((1, _H2), lambda i: (0, 0)),       # b2
            pl.BlockSpec((_H2, n_pad), lambda i: (0, 0)),   # head W (lane-dense)
            pl.BlockSpec((1, n_pad), lambda i: (0, 0)),     # head b
        ],
        out_specs=pl.BlockSpec((tb, n_pad), lambda i: (i, 0)),
        compiler_params=pltpu.CompilerParams(
            dimension_semantics=("parallel",),  # v7x: split batch tiles over 2 TCs
        ),
    )(state, w1, b1, w2, b2, wh, bh)


@partial(jax.jit, static_argnames=("n_out",))
def _forward_impl(state, w1, b1, w2, b2, wh, bh, *, n_out):
    out = _run_mlp(state, w1, b1, w2, b2, wh, bh)
    return out[:, :n_out]


@partial(jax.jit, static_argnames=("head_slices",))
def _forward_all_impl(state, w1, b1, w2, b2, w_all, b_all, *, head_slices):
    out = _run_mlp(state, w1, b1, w2, b2, w_all, b_all)
    return tuple(out[:, off:off + n] for (off, n) in head_slices)


def pad_params(params, input_dim):
    """Zero-pad the head weights ONCE so every kernel store is lane-dense.

    Each head is padded to [128, round_up(n_out, 128)] columns; real logits are
    sliced out in the wrapper. All three padded heads are also concatenated
    into one slab (w_all / b_all) for the fused all-heads path.
    """
    del input_dim  # feature dim is used at its natural size (no K padding needed)
    pp = {
        "w1": params["w1"].astype(jnp.float32),
        "b1": params["b1"].astype(jnp.float32),
        "w2": params["w2"].astype(jnp.float32),
        "b2": params["b2"].astype(jnp.float32),
    }
    w_slabs, b_slabs = [], []
    off = 0
    for name in ("what", "how", "if_can"):
        w, b = params[f"w_{name}"], params[f"b_{name}"]
        n = w.shape[1]
        n_pad = _round_up(n, _LANE)
        w_pad = jnp.zeros((_H2, n_pad), jnp.float32).at[:, :n].set(w)
        b_pad = jnp.zeros((1, n_pad), jnp.float32).at[:, :n].set(b)
        pp[f"w_{name}"] = w_pad
        pp[f"b_{name}"] = b_pad
        pp[f"n_{name}"] = int(n)
        pp[f"off_{name}"] = int(off)
        w_slabs.append(w_pad)
        b_slabs.append(b_pad)
        off += n_pad
    pp["w_all"] = jnp.concatenate(w_slabs, axis=1)
    pp["b_all"] = jnp.concatenate(b_slabs, axis=1)
    return pp


def dpo_reference_forward(state, pparams, question_type):
    """Pallas forward pass of ReferenceModel for a single question_type."""
    head = question_type if question_type in ("what", "how") else "if_can"
    return _forward_impl(
        state,
        pparams["w1"], pparams["b1"], pparams["w2"], pparams["b2"],
        pparams[f"w_{head}"], pparams[f"b_{head}"],
        n_out=pparams[f"n_{head}"],
    )


def dpo_reference_forward_all(state, pparams):
    """Fused path: run the shared layers once and emit all three heads."""
    head_slices = tuple(
        (pparams[f"off_{h}"], pparams[f"n_{h}"]) for h in ("what", "how", "if_can")
    )
    outs = _forward_all_impl(
        state,
        pparams["w1"], pparams["b1"], pparams["w2"], pparams["b2"],
        pparams["w_all"], pparams["b_all"],
        head_slices=head_slices,
    )
    return dict(zip(("what", "how", "if_can"), outs))


def init_params(key, input_dim, action_counts):
    """Deterministic synthetic parameters matching DPOActorNetwork(variant=None)."""
    ks = jax.random.split(key, 10)

    def linear(kw, kb, fan_in, fan_out):
        # Uniform(-1/sqrt(fan_in), 1/sqrt(fan_in)), like torch.nn.Linear default.
        bound = 1.0 / jnp.sqrt(jnp.float32(fan_in))
        w = jax.random.uniform(kw, (fan_in, fan_out), jnp.float32, -bound, bound)
        b = jax.random.uniform(kb, (1, fan_out), jnp.float32, -bound, bound)
        return w, b

    w1, b1 = linear(ks[0], ks[1], input_dim, _H1)
    w2, b2 = linear(ks[2], ks[3], _H1, _H2)
    w_what, b_what = linear(ks[4], ks[5], _H2, action_counts["what"])
    w_how, b_how = linear(ks[6], ks[7], _H2, action_counts["how"])
    w_ic, b_ic = linear(ks[8], ks[9], _H2, action_counts["if_can"])
    # self.beta is a scalar nn.Parameter unused in forward(); kept for parity.
    beta = jnp.float32(0.1)
    return {
        "w1": w1, "b1": b1,
        "w2": w2, "b2": b2,
        "w_what": w_what, "b_what": b_what,
        "w_how": w_how, "b_how": b_how,
        "w_if_can": w_ic, "b_if_can": b_ic,
        "beta": beta,
    }


def reference_jax(state, params, question_type):
    """Pure-JAX reference for correctness checking."""
    h1 = jnp.maximum(state @ params["w1"] + params["b1"], 0.0)
    h2 = jnp.maximum(h1 @ params["w2"] + params["b2"], 0.0)
    if question_type == "what":
        wh, bh = params["w_what"], params["b_what"]
    elif question_type == "how":
        wh, bh = params["w_how"], params["b_how"]
    else:
        wh, bh = params["w_if_can"], params["b_if_can"]
    return h2 @ wh + bh


if __name__ == "__main__":
    key = jax.random.PRNGKey(0)
    k_param, k_state, k_state_big = jax.random.split(key, 3)

    input_dim = 32
    batch = 2
    action_counts = {"what": 8, "how": 6, "if_can": 4}

    params = init_params(k_param, input_dim, action_counts)
    pparams = pad_params(params, input_dim)

    state = jax.random.normal(k_state, (batch, input_dim), jnp.float32)
    state_big = jax.random.normal(k_state_big, (300, input_dim), jnp.float32)

    ok = True
    for qt in ("what", "how", "if_can"):
        # Small batch (B=2 -> one 8-row edge-masked tile).
        logits = jax.block_until_ready(dpo_reference_forward(state, pparams, qt))
        ref = reference_jax(state, params, qt)
        assert logits.shape == (batch, action_counts[qt]), (qt, logits.shape)
        if not jnp.allclose(logits, ref, atol=1e-5, rtol=1e-5):
            ok = False

        # Larger batch exercises balanced tiles and a partial last tile.
        logits_big = jax.block_until_ready(dpo_reference_forward(state_big, pparams, qt))
        ref_big = reference_jax(state_big, params, qt)
        assert logits_big.shape == (300, action_counts[qt]), (qt, logits_big.shape)
        if not jnp.allclose(logits_big, ref_big, atol=1e-5, rtol=1e-5):
            ok = False

    # Fused all-heads path: shared layers computed once for all three heads.
    all_logits = dpo_reference_forward_all(state_big, pparams)
    jax.block_until_ready(all_logits)
    for qt in ("what", "how", "if_can"):
        ref_big = reference_jax(state_big, params, qt)
        assert all_logits[qt].shape == (300, action_counts[qt]), (qt, all_logits[qt].shape)
        if not jnp.allclose(all_logits[qt], ref_big, atol=1e-5, rtol=1e-5):
            ok = False

    if ok:
        print("KERNEL_OK")
</pallas_src>

<mosaic_0001>
module attributes {stable_mosaic.version = 11 : i64} {
  func.func @_mlp_head_kernel(%arg0: i32, %arg1: memref<8x32xf32, #tpu.memory_space<vmem>>, %arg2: memref<32x256xf32, #tpu.memory_space<vmem>>, %arg3: memref<1x256xf32, #tpu.memory_space<vmem>>, %arg4: memref<256x128xf32, #tpu.memory_space<vmem>>, %arg5: memref<1x128xf32, #tpu.memory_space<vmem>>, %arg6: memref<128x128xf32, #tpu.memory_space<vmem>>, %arg7: memref<1x128xf32, #tpu.memory_space<vmem>>, %arg8: memref<8x128xf32, #tpu.memory_space<vmem>>) attributes {dimension_semantics = [#tpu.dimension_semantics<parallel>], iteration_bounds = array<i64: 1>, scalar_prefetch = 0 : i64, scratch_operands = 0 : i64, tpu.core_type = #tpu.core_type<tc>, window_params = [{transform_indices = @transform_0, window_bounds = array<i64: 8, 32>}, {pipeline_mode = #tpu.pipeline_mode<synchronous>, transform_indices = @transform_1, window_bounds = array<i64: 32, 256>}, {pipeline_mode = #tpu.pipeline_mode<synchronous>, transform_indices = @transform_2, window_bounds = array<i64: 1, 256>}, {pipeline_mode = #tpu.pipeline_mode<synchronous>, transform_indices = @transform_3, window_bounds = array<i64: 256, 128>}, {pipeline_mode = #tpu.pipeline_mode<synchronous>, transform_indices = @transform_4, window_bounds = array<i64: 1, 128>}, {pipeline_mode = #tpu.pipeline_mode<synchronous>, transform_indices = @transform_5, window_bounds = array<i64: 128, 128>}, {pipeline_mode = #tpu.pipeline_mode<synchronous>, transform_indices = @transform_6, window_bounds = array<i64: 1, 128>}, {transform_indices = @transform_7, window_bounds = array<i64: 8, 128>}]} {
    %c0 = arith.constant 0 : index
    %c0_0 = arith.constant 0 : index
    %0 = vector.load %arg1[%c0, %c0_0] : memref<8x32xf32, #tpu.memory_space<vmem>>, vector<8x32xf32>
    %c0_1 = arith.constant 0 : index
    %c0_2 = arith.constant 0 : index
    %1 = vector.load %arg2[%c0_1, %c0_2] : memref<32x256xf32, #tpu.memory_space<vmem>>, vector<32x256xf32>
    %cst = arith.constant dense<0.000000e+00> : vector<8x256xf32>
    %2 = tpu.matmul %0, %1, %cst {dimension_numbers = #tpu.dot_dimension_numbers<[1], [0], [0], [1], [0, 0, 1, 1], [], []>} : vector<8x32xf32>, vector<32x256xf32>, vector<8x256xf32> -> vector<8x256xf32>
    %c0_3 = arith.constant 0 : index
    %c0_4 = arith.constant 0 : index
    %3 = vector.load %arg3[%c0_3, %c0_4] : memref<1x256xf32, #tpu.memory_space<vmem>>, vector<1x256xf32>
    %4 = vector.broadcast %3 : vector<1x256xf32> to vector<8x256xf32>
    %5 = arith.addf %2, %4 : vector<8x256xf32>
    %cst_5 = arith.constant 0.000000e+00 : f32
    %6 = vector.broadcast %cst_5 : f32 to vector<8x256xf32>
    %7 = arith.maximumf %5, %6 : vector<8x256xf32>
    %c0_6 = arith.constant 0 : index
    %c0_7 = arith.constant 0 : index
    %8 = vector.load %arg4[%c0_6, %c0_7] : memref<256x128xf32, #tpu.memory_space<vmem>>, vector<256x128xf32>
    %cst_8 = arith.constant dense<0.000000e+00> : vector<8x128xf32>
    %9 = tpu.matmul %7, %8, %cst_8 {dimension_numbers = #tpu.dot_dimension_numbers<[1], [0], [0], [1], [0, 0, 1, 1], [], []>} : vector<8x256xf32>, vector<256x128xf32>, vector<8x128xf32> -> vector<8x128xf32>
    %c0_9 = arith.constant 0 : index
    %c0_10 = arith.constant 0 : index
    %10 = vector.load %arg5[%c0_9, %c0_10] : memref<1x128xf32, #tpu.memory_space<vmem>>, vector<1x128xf32>
    %11 = vector.broadcast %10 : vector<1x128xf32> to vector<8x128xf32>
    %12 = arith.addf %9, %11 : vector<8x128xf32>
    %cst_11 = arith.constant 0.000000e+00 : f32
    %13 = vector.broadcast %cst_11 : f32 to vector<8x128xf32>
    %14 = arith.maximumf %12, %13 : vector<8x128xf32>
    %c0_12 = arith.constant 0 : index
    %c0_13 = arith.constant 0 : index
    %15 = vector.load %arg6[%c0_12, %c0_13] : memref<128x128xf32, #tpu.memory_space<vmem>>, vector<128x128xf32>
    %cst_14 = arith.constant dense<0.000000e+00> : vector<8x128xf32>
    %16 = tpu.matmul %14, %15, %cst_14 {dimension_numbers = #tpu.dot_dimension_numbers<[1], [0], [0], [1], [0, 0, 1, 1], [], []>} : vector<8x128xf32>, vector<128x128xf32>, vector<8x128xf32> -> vector<8x128xf32>
    %c0_15 = arith.constant 0 : index
    %c0_16 = arith.constant 0 : index
    %17 = vector.load %arg7[%c0_15, %c0_16] : memref<1x128xf32, #tpu.memory_space<vmem>>, vector<1x128xf32>
    %18 = vector.broadcast %17 : vector<1x128xf32> to vector<8x128xf32>
    %19 = arith.addf %16, %18 : vector<8x128xf32>
    %c0_17 = arith.constant 0 : index
    %c0_18 = arith.constant 0 : index
    %20 = vector.load %arg8[%c0_17, %c0_18] : memref<8x128xf32, #tpu.memory_space<vmem>>, vector<8x128xf32>
    tpu.vector_store %arg8[%c0_17, %c0_18], %19 {strides = array<i32>} : memref<8x128xf32, #tpu.memory_space<vmem>>, vector<8x128xf32>,
    return
  }
  func.func @transform_0(%arg0: i32) -> (i32, i32) {
    %c0_i32 = arith.constant 0 : i32
    %c0_i32_0 = arith.constant 0 : i32
    return %arg0, %c0_i32 : i32, i32
  }
  func.func @transform_1(%arg0: i32) -> (i32, i32) {
    %c0_i32 = arith.constant 0 : i32
    %c0_i32_0 = arith.constant 0 : i32
    %c0_i32_1 = arith.constant 0 : i32
    return %c0_i32, %c0_i32_0 : i32, i32
  }
  func.func @transform_2(%arg0: i32) -> (i32, i32) {
    %c0_i32 = arith.constant 0 : i32
    %c0_i32_0 = arith.constant 0 : i32
    %c0_i32_1 = arith.constant 0 : i32
    return %c0_i32, %c0_i32_0 : i32, i32
  }
  func.func @transform_3(%arg0: i32) -> (i32, i32) {
    %c0_i32 = arith.constant 0 : i32
    %c0_i32_0 = arith.constant 0 : i32
    %c0_i32_1 = arith.constant 0 : i32
    return %c0_i32, %c0_i32_0 : i32, i32
  }
  func.func @transform_4(%arg0: i32) -> (i32, i32) {
    %c0_i32 = arith.constant 0 : i32
    %c0_i32_0 = arith.constant 0 : i32
    %c0_i32_1 = arith.constant 0 : i32
    return %c0_i32, %c0_i32_0 : i32, i32
  }
  func.func @transform_5(%arg0: i32) -> (i32, i32) {
    %c0_i32 = arith.constant 0 : i32
    %c0_i32_0 = arith.constant 0 : i32
    %c0_i32_1 = arith.constant 0 : i32
    return %c0_i32, %c0_i32_0 : i32, i32
  }
  func.func @transform_6(%arg0: i32) -> (i32, i32) {
    %c0_i32 = arith.constant 0 : i32
    %c0_i32_0 = arith.constant 0 : i32
    %c0_i32_1 = arith.constant 0 : i32
    return %c0_i32, %c0_i32_0 : i32, i32
  }
  func.func @transform_7(%arg0: i32) -> (i32, i32) {
    %c0_i32 = arith.constant 0 : i32
    %c0_i32_0 = arith.constant 0 : i32
    return %arg0, %c0_i32 : i32, i32
  }
}

</mosaic_0001>

<bundles_post_ra>
// kernel: _forward_impl.1
= control target key start
LH: loop header
LB: loop body
LE: loop exit
PB: predicated region body
PF: predicated region fallthrough
CT: control target
= control target key end

     0   :  { %12 = vsyncpa [#allocation3], 0  ;;  %s820_s0 = inlined_call_operand.hbm [shape: f32[2,32], index: 0, kind: input, shape index: {}]   ;;  %s821_s1 = inlined_call_operand.hbm [shape: f32[32,256], index: 1, kind: input, shape index: {}]   ;;  %s822_s2 = inlined_call_operand.vmem [shape: f32[1,256], index: 2, kind: input, shape index: {}]   ;;  %s823_s3 = inlined_call_operand.hbm [shape: f32[256,128], index: 3, kind: input, shape index: {}]   ;;  %s824_s4 = inlined_call_operand.vmem [shape: f32[1,128], index: 4, kind: input, shape index: {}]   ;;  %s825_s5 = inlined_call_operand.hbm [shape: f32[128,128], index: 5, kind: input, shape index: {}]   ;;  %s826_s6 = inlined_call_operand.vmem [shape: f32[1,128], index: 6, kind: input, shape index: {}]   ;;  %s827_s7 = inlined_call_operand.hbm [shape: f32[2,128], index: 7, kind: output, shape index: {}]  }
   0x1   :  { %13 = vsyncpa [#allocation6], 0 }
   0x2   :  { %14 = vsyncpa [#allocation9], 0 }
   0x3   :  { %15 = vsyncpa [#allocation4], 0 }
   0x4   :  { %20 = vsyncadd [#allocation3], 96  ;;  %s689_s24 = smov [#allocation5]   ;;  %s571_s28 = scalar_lea.hbm %s821_s1, 1024 }
   0x5   :  { %s33_s25 = sshll.u32 %s689_s24, 4  ;;  %p572_p0 = scmp.ne.s32.totalorder %s821_s1, %s571_s28  ;;  %s34_s25 = int_to_ptr.vmem [resolvable:$true] %s33_s25 }
   0x6   :  { %p575_p1 = scmp.lt.u32.totalorder %s571_s28, %s821_s1 }
   0x8   :  { %p577_p2 = pnand %p575_p1, %p572_p0 }
   0xa   :  { %580 = shalt.err (!%p577_p2)
}
   0xb   :  { %s581_s10 = scalar_lea.vmem %s34_s25, 1024  ;;  %p586_p4 = scmp.lt.s32.totalorder %s34_s25, %s34_s25 }
   0xc   :  { %p582_p3 = scmp.ne.s32.totalorder %s34_s25, %s581_s10  ;;  %p587_p5 = scmp.lt.s32.totalorder %s581_s10, %s581_s10 }
   0xe   :  { %p588_p6 = por %p587_p5, %p586_p4 }
  0x10   :  { %p589_p7 = pnand %p588_p6, %p582_p3 }
  0x12   :  { %592 = shalt.err (!%p589_p7)
}
  0x13   :  { %s690_s11 = smov 256   ;;  %s691_s12 = smov 16  }
  0x14   :  { %39 = dma.hbm_to_vmem [thread:$0]  %s821_s1, 1024, %s34_s25, [#allocation6], %s690_s11, %s690_s11, %s691_s12  }
  0x15   :  { %s692_s15 = smov [#allocation2]   ;;  %s593_s19 = scalar_lea.hbm %s820_s0, 32 }
  0x16   :  { %s21_s16 = sshll.u32 %s692_s15, 4  ;;  %p594_p8 = scmp.ne.s32.totalorder %s820_s0, %s593_s19  ;;  %s22_s16 = int_to_ptr.vmem [resolvable:$true] %s21_s16 }
  0x17   :  { %p597_p9 = scmp.lt.u32.totalorder %s593_s19, %s820_s0 }
  0x19   :  { %p599_p10 = pnand %p597_p9, %p594_p8 }
  0x1b   :  { %602 = shalt.err (!%p599_p10)
}
  0x1c   :  { %s603_s24 = scalar_lea.vmem %s22_s16, 32  ;;  %s607_s1 = scalar_lea.vmem %s22_s16, 128 }
  0x1d   :  { %p604_p11 = scmp.ne.s32.totalorder %s22_s16, %s603_s24  ;;  %p608_p12 = scmp.lt.s32.totalorder %s22_s16, %s22_s16 }
  0x1e   :  { %p609_p13 = scmp.lt.s32.totalorder %s607_s1, %s603_s24 }
  0x20   :  { %p610_p0 = por %p609_p13, %p608_p12 }
  0x22   :  { %p611_p1 = pnand %p610_p0, %p604_p11 }
  0x24   :  { %614 = shalt.err (!%p611_p1)
}
  0x25   :  { %s693_s25 = smov 32   ;;  %s694_s26 = smov 2  }
  0x26   :  { %27 = dma.hbm_to_vmem [thread:$0]  %s820_s0, 32, %s22_s16, [#allocation3], %s693_s25, %s693_s25, %s694_s26  }
  0x27   :  { %s695_s29 = smov [#allocation7]   ;;  %s615_s10 = scalar_lea.hbm %s823_s3, 4096 }
  0x28   :  { %s47_s30 = sshll.u32 %s695_s29, 4  ;;  %p616_p2 = scmp.ne.s32.totalorder %s823_s3, %s615_s10  ;;  %s48_s30 = int_to_ptr.vmem [resolvable:$true] %s47_s30 }
  0x29   :  { %p619_p3 = scmp.lt.u32.totalorder %s615_s10, %s823_s3 }
  0x2b   :  { %p621_p4 = pnand %p619_p3, %p616_p2 }
  0x2d   :  { %624 = shalt.err (!%p621_p4)
}
  0x2e   :  { %s625_s15 = scalar_lea.vmem %s48_s30, 4096  ;;  %p630_p6 = scmp.lt.s32.totalorder %s48_s30, %s48_s30 }
  0x2f   :  { %p626_p5 = scmp.ne.s32.totalorder %s48_s30, %s625_s15  ;;  %p631_p7 = scmp.lt.s32.totalorder %s625_s15, %s625_s15 }
  0x31   :  { %p632_p8 = por %p631_p7, %p630_p6 }
  0x33   :  { %p633_p9 = pnand %p632_p8, %p626_p5 }
  0x35   :  { %636 = shalt.err (!%p633_p9)
}
  0x36   :  { %s696_s0 = smov 128   ;;  %s697_s16 = smov 8  }
  0x37   :  { %53 = dma.hbm_to_vmem [thread:$0]  %s823_s3, 4096, %s48_s30, [#allocation6], %s696_s0, %s696_s0, %s697_s16  }
  0x38   :  { %s698_s19 = smov [#allocation8]   ;;  %s637_s23 = scalar_lea.hbm %s825_s5, 2048 }
  0x39   :  { %s61_s20 = sshll.u32 %s698_s19, 4  ;;  %p638_p10 = scmp.ne.s32.totalorder %s825_s5, %s637_s23  ;;  %s62_s20 = int_to_ptr.vmem [resolvable:$true] %s61_s20 }
  0x3a   :  { %p641_p11 = scmp.lt.u32.totalorder %s637_s23, %s825_s5 }
  0x3c   :  { %p643_p12 = pnand %p641_p11, %p638_p10 }
  0x3e   :  { %646 = shalt.err (!%p643_p12)
}
  0x3f   :  { %s647_s29 = scalar_lea.vmem %s62_s20, 2048  ;;  %p652_p0 = scmp.lt.s32.totalorder %s62_s20, %s62_s20 }
  0x40   :  { %p648_p13 = scmp.ne.s32.totalorder %s62_s20, %s647_s29  ;;  %p653_p1 = scmp.lt.s32.totalorder %s647_s29, %s647_s29 }
  0x42   :  { %p654_p2 = por %p653_p1, %p652_p0 }
  0x44   :  { %p655_p3 = pnand %p654_p2, %p648_p13 }
  0x46   :  { %658 = shalt.err (!%p655_p3)
}
  0x47   :  { %67 = dma.hbm_to_vmem [thread:$0]  %s825_s5, 2048, %s62_s20, [#allocation9], %s696_s0, %s696_s0, %s697_s16  }
  0x48   :  { %681 = dma.done.wait [#allocation3], 128  }
  0x49   :  { %682 = vsyncadd [#allocation3], 4294967168 }
  0x4a   :  { %683 = dma.done.wait [#allocation6], 5120  }
  0x4b   :  { %684 = vsyncadd [#allocation6], 4294962176 }
  0x4c   :  { %685 = dma.done.wait [#allocation9], 2048  }
  0x4d   :  { %686 = vsyncadd [#allocation9], 4294965248  ;;  %v699_v0 = vmov 0.0   ;;  %v84_v1 = vld [vmem:[#allocation5 + $0x8] sm:$0xff]  ;;  %v86_v2 = vld [vmem:[#allocation5 + $0x18] sm:$0xff]  ;;  %vm103_vm0 = vcmask 261120  }
  0x4e   :  { %171 = vmatprep.mubr.f32.mxu0 %v699_v0  ;;  %v83_v3 = vld [vmem:[#allocation5] sm:$0xff]  ;;  %v493_v4 = vpack.c.bf16 %v86_v2, %v84_v1  ;;  %v85_v5 = vld [vmem:[#allocation5 + $0x10] sm:$0xff]  ;;  %v88_v6 = vld [vmem:[#allocation5 + $0x28] sm:$0xff]  ;;  %v700_v2 = vmov 0.0|0.0   ;;  %vm701_vm1 = vmmov 0  }
  0x4f   :  { %v90_v7 = vld [vmem:[#allocation5 + $0x38] sm:$0xff]  ;;  %v495_v8 = vpack.c.bf16 %v85_v5, %v83_v3  ;;  %v87_v10 = vld [vmem:[#allocation5 + $0x20] sm:$0xff]  ;;  %v89_v11 = vld [vmem:[#allocation5 + $0x30] sm:$0xff] }
  0x50   :  { %v497_v9 = vpack.c.bf16 %v90_v7, %v88_v6  ;;  %494 = vmatprep.subr.bf16.mxu0 %v493_v4  ;;  %v196_v12 = vld [vmem:[#allocation7 + $0x80] sm:$0xff]  ;;  %v197_v13 = vld [vmem:[#allocation7 + $0x88] sm:$0xff]  ;;  %v499_v15 = vpack.c.bf16 %v89_v11, %v87_v10  ;;  %v198_v18 = vld [vmem:[#allocation7 + $0x90] sm:$0xff] }
  0x51   :  { %v180_v14 = vld [vmem:[#allocation7] sm:$0xff]  ;;  %496 = vmatpush1.bf16.msra.mxu0 %v495_v8  ;;  %v501_v16 = vpack.c.bf16 %v197_v13, %v196_v12  ;;  %v181_v17 = vld [vmem:[#allocation7 + $0x8] sm:$0xff]  ;;  %v199_v19 = vld [vmem:[#allocation7 + $0x98] sm:$0xff] }
  0x52   :  { %498 = vmatprep.subr.bf16.mxu0 %v497_v9  ;;  %v503_v20 = vpack.c.bf16 %v181_v17, %v180_v14  ;;  %v505_v21 = vpack.c.bf16 %v199_v19, %v198_v18  ;;  %v182_v22 = vld [vmem:[#allocation7 + $0x10] sm:$0xff]  ;;  %v183_v23 = vld [vmem:[#allocation7 + $0x18] sm:$0xff]  ;;  %v200_v24 = vld [vmem:[#allocation7 + $0xa0] sm:$0xff]  ;;  %v93_v18 = vlaneseq }
  0x53   :  { %502 = vmatprep.subr.bf16.mxu1 %v501_v16  ;;  %v201_v25 = vld [vmem:[#allocation7 + $0xa8] sm:$0xff]  ;;  %v507_v26 = vpack.c.bf16 %v183_v23, %v182_v22  ;;  %v82_v27 = vld [vmem:[#allocation2] sm:$0xff]  ;;  %v184_v29 = vld [vmem:[#allocation7 + $0x20] sm:$0xff] }
  0x54   :  { %504 = vmatpush3.bf16.msra.mxu1 %v503_v20  ;;  %v509_v28 = vpack.c.bf16 %v201_v25, %v200_v24  ;;  %v185_v30 = vld [vmem:[#allocation7 + $0x28] sm:$0xff]  ;;  %v202_v31 = vld [vmem:[#allocation7 + $0xb0] sm:$0xff]  ;;  %v203_v32 = vld [vmem:[#allocation7 + $0xb8] sm:$0xff]  ;;  %v94_v19 = vshrl.u32 %v93_v18, 7 }
  0x55   :  { %500 = vmatpush1.bf16.msra.mxu0 %v499_v15  ;;  %506 = vmatprep.subr.bf16.mxu1 %v505_v21  ;;  %v511_v33 = vpack.c.bf16 %v185_v30, %v184_v29  ;;  %v513_v34 = vpack.c.bf16 %v203_v32, %v202_v31  ;;  %v186_v35 = vld [vmem:[#allocation7 + $0x30] sm:$0xff]  ;;  %v187_v36 = vld [vmem:[#allocation7 + $0x38] sm:$0xff]  ;;  %v204_v37 = vld [vmem:[#allocation7 + $0xc0] sm:$0xff] }
  0x56   :  { %v205_v38 = vld [vmem:[#allocation7 + $0xc8] sm:$0xff]  ;;  %v515_v39 = vpack.c.bf16 %v187_v36, %v186_v35  ;;  %v188_v41 = vld [vmem:[#allocation7 + $0x40] sm:$0xff]  ;;  %v206_v43 = vld [vmem:[#allocation7 + $0xd0] sm:$0xff]  ;;  %533 = vmatprep.subr.bf16.mxu0 %v700_v2  ;;  %v95_v20 = vsub.s32 0, %v94_v19  ;;  %v99_v22 = vsub.s32 1, %v94_v19 }
  0x57   :  { %v517_v40 = vpack.c.bf16 %v205_v38, %v204_v37  ;;  %v189_v42 = vld [vmem:[#allocation7 + $0x48] sm:$0xff]  ;;  %v207_v44 = vld [vmem:[#allocation7 + $0xd8] sm:$0xff]  ;;  %v190_v47 = vld [vmem:[#allocation7 + $0x50] sm:$0xff] }
  0x58   :  { %403 = vmatmul.mubr.msk.f32.vlgmr.msra.gmra.mrb[0].mxu0 %vm103_vm0, %v82_v27  ;;  %508 = vmatpush3.bf16.msra.mxu1 %v507_v26  ;;  %v519_v45 = vpack.c.bf16 %v189_v42, %v188_v41  ;;  %v521_v46 = vpack.c.bf16 %v207_v44, %v206_v43  ;;  %v191_v48 = vld [vmem:[#allocation7 + $0x58] sm:$0xff]  ;;  %v208_v49 = vld [vmem:[#allocation7 + $0xe0] sm:$0xff]  ;;  %v209_v50 = vld [vmem:[#allocation7 + $0xe8] sm:$0xff] }
  0x59   :  { %510 = vmatprep.subr.bf16.mxu1 %v509_v28  ;;  %v523_v51 = vpack.c.bf16 %v191_v48, %v190_v47  ;;  %v525_v52 = vpack.c.bf16 %v209_v50, %v208_v49  ;;  %v192_v53 = vld [vmem:[#allocation7 + $0x60] sm:$0xff]  ;;  %v193_v54 = vld [vmem:[#allocation7 + $0x68] sm:$0xff]  ;;  %v210_v56 = vld [vmem:[#allocation7 + $0xf0] sm:$0xff]  ;;  %490 = vmatprep.mubr.msk.f32.mxu0 %vm701_vm1, %v699_v0 }
  0x5a   :  { %v527_v55 = vpack.c.bf16 %v193_v54, %v192_v53  ;;  %v211_v57 = vld [vmem:[#allocation7 + $0xf8] sm:$0xff]  ;;  %v194_v59 = vld [vmem:[#allocation7 + $0x70] sm:$0xff]  ;;  %v290_v62 = vld [vmem:[#allocation8] sm:$0xff] }
  0x5b   :  { %v529_v58 = vpack.c.bf16 %v211_v57, %v210_v56  ;;  %v195_v60 = vld [vmem:[#allocation7 + $0x78] sm:$0xff]  ;;  %v291_v63 = vld [vmem:[#allocation8 + $0x8] sm:$0xff]  ;;  %v292_v1 = vld [vmem:[#allocation8 + $0x10] sm:$0xff] }
  0x5c   :  { %512 = vmatpush3.bf16.msra.mxu1 %v511_v33  ;;  %v531_v61 = vpack.c.bf16 %v195_v60, %v194_v59  ;;  %v534_v3 = vpack.c.bf16 %v291_v63, %v290_v62  ;;  %v293_v4 = vld [vmem:[#allocation8 + $0x18] sm:$0xff]  ;;  %v294_v6 = vld [vmem:[#allocation8 + $0x20] sm:$0xff]  ;;  %v295_v7 = vld [vmem:[#allocation8 + $0x28] sm:$0xff] }
  0x5d   :  { %514 = vmatprep.subr.bf16.mxu1 %v513_v34  ;;  %v537_v5 = vpack.c.bf16 %v293_v4, %v292_v1  ;;  %v540_v8 = vpack.c.bf16 %v295_v7, %v294_v6  ;;  %v296_v9 = vld [vmem:[#allocation8 + $0x30] sm:$0xff]  ;;  %v297_v10 = vld [vmem:[#allocation8 + $0x38] sm:$0xff]  ;;  %v298_v12 = vld [vmem:[#allocation8 + $0x40] sm:$0xff] }
  0x5e   :  { %535 = vmatpush3.bf16.msra.mxu0 %v534_v3  ;;  %v543_v11 = vpack.c.bf16 %v297_v10, %v296_v9  ;;  %v299_v13 = vld [vmem:[#allocation8 + $0x48] sm:$0xff]  ;;  %v300_v15 = vld [vmem:[#allocation8 + $0x50] sm:$0xff]  ;;  %v301_v16 = vld [vmem:[#allocation8 + $0x58] sm:$0xff] }
  0x5f   :  { %536 = vmatprep.subr.bf16.mxu0 %v700_v2  ;;  %v546_v14 = vpack.c.bf16 %v299_v13, %v298_v12  ;;  %v549_v17 = vpack.c.bf16 %v301_v16, %v300_v15  ;;  %v91_v21 = vld [vmem:[%s822_s2] sm:$0x3]  ;;  %v302_v31 = vld [vmem:[#allocation8 + $0x60] sm:$0xff]  ;;  %v303_v32 = vld [vmem:[#allocation8 + $0x68] sm:$0xff] }
  0x60   :  { %516 = vmatpush3.bf16.msra.mxu1 %v515_v39  ;;  %v96_v23 = vrot.slane %v91_v21, %v95_v20  ;;  %v100_v24 = vrot.slane %v91_v21, %v99_v22  ;;  %v552_v33 = vpack.c.bf16 %v303_v32, %v302_v31  ;;  %v304_v34 = vld [vmem:[#allocation8 + $0x70] sm:$0xff]  ;;  %v305_v35 = vld [vmem:[#allocation8 + $0x78] sm:$0xff] }
  0x61   :  { %518 = vmatprep.subr.bf16.mxu1 %v517_v40  ;;  %v555_v36 = vpack.c.bf16 %v305_v35, %v304_v34  ;;  %v404_v38 = vld [vmem:[%s824_s4] ss:$0 sm:$0xff] }
  0x62   :  { %538 = vmatpush3.bf16.msra.mxu0 %v537_v5  ;;  %v405_v43 = vld [vmem:[%s826_s6] ss:$0 sm:$0xff] }
  0x63   :  { %539 = vmatprep.subr.bf16.mxu0 %v700_v2 }
  0x64   :  { %520 = vmatpush3.bf16.msra.mxu1 %v519_v45 }
  0x65   :  { %522 = vmatprep.subr.bf16.mxu1 %v521_v46 }
  0x66   :  { %541 = vmatpush3.bf16.msra.mxu0 %v540_v8 }
  0x67   :  { %542 = vmatprep.subr.bf16.mxu0 %v700_v2 }
  0x68   :  { %524 = vmatpush3.bf16.msra.mxu1 %v523_v51 }
  0x69   :  { %526 = vmatprep.subr.bf16.mxu1 %v525_v52 }
  0x6a   :  { %544 = vmatpush3.bf16.msra.mxu0 %v543_v11 }
  0x6b   :  { %545 = vmatprep.subr.bf16.mxu0 %v700_v2 }
  0x6c   :  { %528 = vmatpush3.bf16.msra.mxu1 %v527_v55 }
  0x6d   :  { %530 = vmatprep.subr.bf16.mxu1 %v529_v58 }
  0x6e   :  { %547 = vmatpush3.bf16.msra.mxu0 %v546_v14 }
  0x6f   :  { %548 = vmatprep.subr.bf16.mxu0 %v700_v2 }
  0x70   :  { %532 = vmatpush3.bf16.msra.mxu1 %v531_v61 }
  0x72   :  { %550 = vmatpush3.bf16.msra.mxu0 %v549_v17 }
  0x73   :  { %551 = vmatprep.subr.bf16.mxu0 %v700_v2 }
  0x76   :  { %553 = vmatpush3.bf16.msra.mxu0 %v552_v33 }
  0x77   :  { %554 = vmatprep.subr.bf16.mxu0 %v700_v2 }
  0x7a   :  { %556 = vmatpush3.bf16.msra.mxu0 %v555_v36 }
 0x12b   :  { %v173_v25 = vpop.f32.mrb[0].mxu0 }
 0x12c   :  { %v174_v26 = vadd.f32 %v173_v25, %v96_v23  ;;  %v175_v27 = vpop.f32.mrb[1].mxu0 }
 0x12d   :  { %v176_v28 = vadd.f32 %v175_v27, %v100_v24 }
 0x12e   :  { %v178_v30 = vmax.f32 %v174_v26, 0.0 }
 0x12f   :  { %v179_v29 = vmax.f32 %v176_v28, 0.0 }
 0x131   :  { %283 = vmatprep.mubr.f32.mxu1 %v179_v29 }
 0x132   :  { %284 = vmatmul.mubr.f32.vlgmr.msra.gmra.mrb[0].mxu1 %v178_v30 }
 0x205   :  { %v438_v37 = vpop.f32.mrb[0].mxu1 }
 0x206   :  { %v439_v39 = vpop.f32.mrb[1].mxu1 }
 0x207   :  { %v440_v40 = vadd.f32 %v439_v39, %v438_v37 }
 0x209   :  { %v286_v41 = vadd.f32 %v440_v40, %v404_v38 }
 0x20b   :  { %v289_v42 = vmax.f32 %v286_v41, 0.0 }
 0x20d   :  { %491 = vmatmul.mubr.f32.vlgmr.msra.gmra.mrb[2].mxu0 %v289_v42 }
 0x2e0   :  { %v379_v44 = vpop.f32.mrb[2].mxu0 }
 0x2e1   :  { %v380_v45 = vadd.f32 %v405_v43, %v379_v44  ;;  %v492_v46 = vpop.f32.mrb[3].mxu0 }
 0x2e3   :  { %383 = vst [vmem:[#allocation10] sm:$0xff] %v380_v45 }
 0x2e4   :  { %388 = vsyncadd [#allocation4], 96  ;;  %s702_s12 = smov [#allocation10]  }
 0x2e5   :  { %s389_s13 = sshll.u32 %s702_s12, 4  ;;  %s390_s13 = int_to_ptr.vmem [resolvable:$true] %s389_s13 }
 0x2e6   :  { %s659_s14 = scalar_lea.vmem %s390_s13, 32  ;;  %s663_s4 = scalar_lea.vmem %s390_s13, 128 }
 0x2e7   :  { %p660_p4 = scmp.ne.s32.totalorder %s390_s13, %s659_s14  ;;  %p664_p5 = scmp.lt.s32.totalorder %s390_s13, %s390_s13 }
 0x2e8   :  { %p665_p6 = scmp.lt.s32.totalorder %s663_s4, %s659_s14 }
 0x2ea   :  { %p666_p7 = por %p665_p6, %p664_p5 }
 0x2ec   :  { %p667_p8 = pnand %p666_p7, %p660_p4 }
 0x2ee   :  { %670 = shalt.err (!%p667_p8)
}
 0x2ef   :  { %s671_s6 = scalar_lea.hbm %s827_s7, 32 }
 0x2f0   :  { %p672_p9 = scmp.ne.s32.totalorder %s827_s7, %s671_s6  ;;  %p675_p10 = scmp.lt.u32.totalorder %s671_s6, %s827_s7 }
 0x2f2   :  { %p677_p11 = pnand %p675_p10, %p672_p9 }
 0x2f4   :  { %680 = shalt.err (!%p677_p11)
}
 0x2f5   :  { %395 = dma.vmem_to_hbm [thread:$0]  %s390_s13, 32, %s827_s7, [#allocation4], %s693_s25, %s693_s25, %s694_s26  }
 0x2f6   :  { %687 = dma.done.wait [#allocation4], 128  }
 0x2f7   :  { %688 = vsyncadd [#allocation4], 4294967168 }
 0x2f8   :  { %399 = vsyncpa [#allocation3], 1 }
 0x2f9   :  { %400 = vsyncpa [#allocation6], 1 }
 0x2fa   :  { %401 = vsyncpa [#allocation9], 1 }
 0x2fb   :  { %402 = vsyncpa [#allocation4], 1 }

</bundles_post_ra>
